<compile_context>
chip_gen: v6e
topology: v6e:2x2x1
jax: 0.10.0
libtpu: 0.0.40
codegen_flags: <defaults>
</compile_context>

<pallas_src>
import functools

import jax
import jax.numpy as jnp
from jax.experimental import pallas as pl
from jax.experimental.pallas import tpu as pltpu


def _round_up(n, m):
    return ((n + m - 1) // m) * m


def _choose_batch_tile(batch):
    """Padding-aware batch-tile choice.

    - batch <= 128: a single 8-row-aligned tile (kernel is overhead-bound anyway)
    - otherwise try 512/256/128-row tiles, preferring >=2 grid steps (so the two
      v7x TensorCores both get work via dimension_semantics=("parallel",)),
      then minimal padded rows, then the biggest tile.
    """
    if batch <= 128:
        return _round_up(batch, 8)
    best_tb, best_key = None, None
    for tb in (512, 256, 128):
        bp = _round_up(batch, tb)
        key = (bp // tb < 2,      # prefer >= 2 grid steps (megacore)
               bp - batch,        # then minimal wasted (padded) rows
               -tb)               # then the biggest tile
        if best_key is None or key < best_key:
            best_tb, best_key = tb, key
    return best_tb


def _categorical_kernel(x_ref, w1_ref, b1_ref, w2_ref, b2_ref, w3_ref, b3_ref,
                        seg_ref, colmod_ref, out_ref, *, n_atoms, w_pad):
    # ---- fc1 / fc2 / fc3: bf16 MXU matmuls, f32 accumulate + bias (+ relu) ---
    h1 = jnp.dot(x_ref[...], w1_ref[...], preferred_element_type=jnp.float32)
    h1 = jnp.maximum(h1 + b1_ref[...], 0.0)

    h2 = jnp.dot(h1.astype(jnp.bfloat16), w2_ref[...],
                 preferred_element_type=jnp.float32)
    h2 = jnp.maximum(h2 + b2_ref[...], 0.0)

    logits = jnp.dot(h2.astype(jnp.bfloat16), w3_ref[...],
                     preferred_element_type=jnp.float32)
    logits = logits + b3_ref[...]                      # (TB, Wpad) f32, lane-dense

    # ---- segmented (per atom-group) max: lane-dense roll+max doubling tree ---
    # Groups are n_atoms contiguous lanes. Each step takes the max with the
    # within-group cyclic "col + s" partner, built from two full-row rotations
    # (np.roll convention: out[i] = in[(i - shift) % W]) selected by col%n_atoms.
    # After ceil(log2(n_atoms)) steps every lane holds its group's max.
    colmod = colmod_ref[...]                           # (1, Wpad) int32, VMEM-resident
    m = logits
    s = 1
    while s < n_atoms:                                 # static Python unroll
        fwd = pltpu.roll(m, shift=w_pad - s, axis=1)     # value from col + s
        wrap = pltpu.roll(m, shift=n_atoms - s, axis=1)  # value from col + s - n_atoms
        partner = jnp.where(colmod < (n_atoms - s), fwd, wrap)
        m = jnp.maximum(m, partner)
        s *= 2

    shifted = logits - m                               # <= 0, per-group stabilized
    e = jnp.exp(shifted)

    # ---- per-group sums: block-diagonal bf16 MXU matmul (stays lane-dense) ---
    denom = jnp.dot(e.astype(jnp.bfloat16), seg_ref[...],
                    preferred_element_type=jnp.float32)   # (TB, Wpad)

    inv = pl.reciprocal(denom, approx=True)            # EUP slot, ~free
    out_ref[:, :w_pad] = e * inv                       # prob     (128-lane store)
    out_ref[:, w_pad:] = shifted - jnp.log(denom)      # log_prob (128-lane store)


def categorical_network(x, params, output_dim, n_atoms):
    """params: w1,w2,w3 pre-transposed (in, out) in bf16; b1,b2,b3 as (1, out) f32."""
    B, input_dim = x.shape
    hidden = params["w1"].shape[1]
    w_dim = output_dim * n_atoms
    w_pad = _round_up(w_dim, 128)                      # lane-dense fc3 / output width

    # --- constants built once in the wrapper (hoisted out of the kernel) ------
    w3, b3 = params["w3"], params["b3"]
    if w_pad != w_dim:
        w3 = jnp.pad(w3, ((0, 0), (0, w_pad - w_dim)))           # zero cols
        b3 = jnp.pad(b3, ((0, 0), (0, w_pad - w_dim)))           # zero bias -> finite pad groups
    grp = jnp.arange(w_pad, dtype=jnp.int32) // n_atoms
    seg = (grp[:, None] == grp[None, :]).astype(jnp.bfloat16)    # (Wpad, Wpad) block-diag 0/1
    colmod = (jnp.arange(w_pad, dtype=jnp.int32) % n_atoms).reshape(1, w_pad)

    # --- batch tiling ----------------------------------------------------------
    TB = _choose_batch_tile(B)
    Bp = _round_up(B, TB)
    xb = x.astype(jnp.bfloat16)                        # bf16 DMA (matmul operand dtype)
    if Bp != B:
        xb = jnp.pad(xb, ((0, Bp - B), (0, 0)))
    grid = (Bp // TB,)

    const2d = lambda i: (0, 0)
    in_specs = [
        pl.BlockSpec((TB, input_dim), lambda i: (i, 0)),   # x: batch-blocked
        pl.BlockSpec(params["w1"].shape, const2d),         # weights / biases / tables:
        pl.BlockSpec(params["b1"].shape, const2d),         #   VMEM-resident across grid
        pl.BlockSpec(params["w2"].shape, const2d),
        pl.BlockSpec(params["b2"].shape, const2d),
        pl.BlockSpec(w3.shape, const2d),
        pl.BlockSpec(b3.shape, const2d),
        pl.BlockSpec(seg.shape, const2d),
        pl.BlockSpec(colmod.shape, const2d),
    ]
    out_specs = pl.BlockSpec((TB, 2 * w_pad), lambda i: (i, 0))   # fused prob|logp slab
    out_shape = jax.ShapeDtypeStruct((Bp, 2 * w_pad), jnp.float32)

    flops = 2 * Bp * (input_dim * hidden + hidden * hidden
                      + hidden * w_pad + w_pad * w_pad)
    bytes_accessed = (int(xb.size) * 2
                      + sum(int(v.size) * v.dtype.itemsize for v in params.values())
                      + int(seg.size) * 2 + 2 * Bp * w_pad * 4)
    cost = pl.CostEstimate(flops=flops, transcendentals=2 * Bp * w_pad,
                           bytes_accessed=bytes_accessed)

    fused = pl.pallas_call(
        functools.partial(_categorical_kernel, n_atoms=n_atoms, w_pad=w_pad),
        out_shape=out_shape,
        grid=grid,
        in_specs=in_specs,
        out_specs=out_specs,
        compiler_params=pltpu.CompilerParams(dimension_semantics=("parallel",)),
        cost_estimate=cost,
    )(xb, params["w1"], params["b1"], params["w2"], params["b2"], w3, b3,
      seg, colmod)

    prob = fused[:B, :w_dim].reshape(B, output_dim, n_atoms)
    log_prob = fused[:B, w_pad:w_pad + w_dim].reshape(B, output_dim, n_atoms)
    return {"prob": prob, "log_prob": log_prob}


def init_params(key, input_dim, output_dim, n_atoms, hidden=256):
    """Deterministic synthetic parameters (PyTorch Linear-like uniform init).

    Weights stored pre-transposed (in, out) in bf16; biases as (1, out) f32.
    """
    ks = jax.random.split(key, 6)

    def linear(kw, kb, fan_in, fan_out):
        bound = 1.0 / jnp.sqrt(fan_in)
        w = jax.random.uniform(kw, (fan_in, fan_out), jnp.float32, -bound, bound)
        b = jax.random.uniform(kb, (1, fan_out), jnp.float32, -bound, bound)
        return w.astype(jnp.bfloat16), b

    w1, b1 = linear(ks[0], ks[1], input_dim, hidden)
    w2, b2 = linear(ks[2], ks[3], hidden, hidden)
    w3, b3 = linear(ks[4], ks[5], hidden, output_dim * n_atoms)
    return {"w1": w1, "b1": b1, "w2": w2, "b2": b2, "w3": w3, "b3": b3}


if __name__ == "__main__":
    input_dim, output_dim, n_atoms = 32, 4, 8
    batch = 8

    key = jax.random.PRNGKey(0)
    k_params, k_x = jax.random.split(key)
    params = init_params(k_params, input_dim, output_dim, n_atoms)
    x = jax.random.normal(k_x, (batch, input_dim), jnp.float32)

    out = categorical_network(x, params, output_dim, n_atoms)
    jax.block_until_ready(out)

    # ---- pure-JAX reference (same bf16-rounded weights, f32 math) ------------
    w1 = params["w1"].astype(jnp.float32); b1 = params["b1"].astype(jnp.float32)
    w2 = params["w2"].astype(jnp.float32); b2 = params["b2"].astype(jnp.float32)
    w3 = params["w3"].astype(jnp.float32); b3 = params["b3"].astype(jnp.float32)
    h1 = jax.nn.relu(x @ w1 + b1)
    h2 = jax.nn.relu(h1 @ w2 + b2)
    logits = (h2 @ w3 + b3).reshape(batch, output_dim, n_atoms)
    ref_prob = jax.nn.softmax(logits, axis=-1)
    ref_logp = jax.nn.log_softmax(logits, axis=-1)

    # bf16 matmul operands + bf16 segment-sum + approx reciprocal -> loosened tol
    assert jnp.allclose(out["prob"], ref_prob, atol=2e-2, rtol=2e-2), "prob mismatch"
    assert jnp.allclose(out["log_prob"], ref_logp, atol=2e-2, rtol=2e-2), "log_prob mismatch"
    assert jnp.allclose(jnp.sum(out["prob"], axis=-1), 1.0, atol=1e-2)

    print("KERNEL_OK")
</pallas_src>

<mosaic_0001>
module attributes {stable_mosaic.version = 11 : i64} {
  func.func @_categorical_kernel(%arg0: i32, %arg1: memref<8x32xbf16, #tpu.memory_space<vmem>>, %arg2: memref<32x256xbf16, #tpu.memory_space<vmem>>, %arg3: memref<1x256xf32, #tpu.memory_space<vmem>>, %arg4: memref<256x256xbf16, #tpu.memory_space<vmem>>, %arg5: memref<1x256xf32, #tpu.memory_space<vmem>>, %arg6: memref<256x128xbf16, #tpu.memory_space<vmem>>, %arg7: memref<1x128xf32, #tpu.memory_space<vmem>>, %arg8: memref<128x128xbf16, #tpu.memory_space<vmem>>, %arg9: memref<1x128xi32, #tpu.memory_space<vmem>>, %arg10: memref<8x256xf32, #tpu.memory_space<vmem>>) attributes {dimension_semantics = [#tpu.dimension_semantics<parallel>], iteration_bounds = array<i64: 1>, scalar_prefetch = 0 : i64, scratch_operands = 0 : i64, tpu.core_type = #tpu.core_type<tc>, window_params = [{transform_indices = @transform_0, window_bounds = array<i64: 8, 32>}, {pipeline_mode = #tpu.pipeline_mode<synchronous>, transform_indices = @transform_1, window_bounds = array<i64: 32, 256>}, {pipeline_mode = #tpu.pipeline_mode<synchronous>, transform_indices = @transform_2, window_bounds = array<i64: 1, 256>}, {pipeline_mode = #tpu.pipeline_mode<synchronous>, transform_indices = @transform_3, window_bounds = array<i64: 256, 256>}, {pipeline_mode = #tpu.pipeline_mode<synchronous>, transform_indices = @transform_4, window_bounds = array<i64: 1, 256>}, {pipeline_mode = #tpu.pipeline_mode<synchronous>, transform_indices = @transform_5, window_bounds = array<i64: 256, 128>}, {pipeline_mode = #tpu.pipeline_mode<synchronous>, transform_indices = @transform_6, window_bounds = array<i64: 1, 128>}, {pipeline_mode = #tpu.pipeline_mode<synchronous>, transform_indices = @transform_7, window_bounds = array<i64: 128, 128>}, {pipeline_mode = #tpu.pipeline_mode<synchronous>, transform_indices = @transform_8, window_bounds = array<i64: 1, 128>}, {transform_indices = @transform_9, window_bounds = array<i64: 8, 256>}]} {
    %c0 = arith.constant 0 : index
    %c0_0 = arith.constant 0 : index
    %0 = vector.load %arg1[%c0, %c0_0] : memref<8x32xbf16, #tpu.memory_space<vmem>>, vector<8x32xbf16>
    %c0_1 = arith.constant 0 : index
    %c0_2 = arith.constant 0 : index
    %1 = vector.load %arg2[%c0_1, %c0_2] : memref<32x256xbf16, #tpu.memory_space<vmem>>, vector<32x256xbf16>
    %cst = arith.constant dense<0.000000e+00> : vector<8x256xf32>
    %2 = tpu.matmul %0, %1, %cst {dimension_numbers = #tpu.dot_dimension_numbers<[1], [0], [0], [1], [0, 0, 1, 1], [], []>} : vector<8x32xbf16>, vector<32x256xbf16>, vector<8x256xf32> -> vector<8x256xf32>
    %c0_3 = arith.constant 0 : index
    %c0_4 = arith.constant 0 : index
    %3 = vector.load %arg3[%c0_3, %c0_4] : memref<1x256xf32, #tpu.memory_space<vmem>>, vector<1x256xf32>
    %4 = vector.broadcast %3 : vector<1x256xf32> to vector<8x256xf32>
    %5 = arith.addf %2, %4 : vector<8x256xf32>
    %cst_5 = arith.constant 0.000000e+00 : f32
    %6 = vector.broadcast %cst_5 : f32 to vector<8x256xf32>
    %7 = arith.maximumf %5, %6 : vector<8x256xf32>
    %8 = arith.truncf %7 : vector<8x256xf32> to vector<8x256xbf16>
    %c0_6 = arith.constant 0 : index
    %c0_7 = arith.constant 0 : index
    %9 = vector.load %arg4[%c0_6, %c0_7] : memref<256x256xbf16, #tpu.memory_space<vmem>>, vector<256x256xbf16>
    %cst_8 = arith.constant dense<0.000000e+00> : vector<8x256xf32>
    %10 = tpu.matmul %8, %9, %cst_8 {dimension_numbers = #tpu.dot_dimension_numbers<[1], [0], [0], [1], [0, 0, 1, 1], [], []>} : vector<8x256xbf16>, vector<256x256xbf16>, vector<8x256xf32> -> vector<8x256xf32>
    %c0_9 = arith.constant 0 : index
    %c0_10 = arith.constant 0 : index
    %11 = vector.load %arg5[%c0_9, %c0_10] : memref<1x256xf32, #tpu.memory_space<vmem>>, vector<1x256xf32>
    %12 = vector.broadcast %11 : vector<1x256xf32> to vector<8x256xf32>
    %13 = arith.addf %10, %12 : vector<8x256xf32>
    %cst_11 = arith.constant 0.000000e+00 : f32
    %14 = vector.broadcast %cst_11 : f32 to vector<8x256xf32>
    %15 = arith.maximumf %13, %14 : vector<8x256xf32>
    %16 = arith.truncf %15 : vector<8x256xf32> to vector<8x256xbf16>
    %c0_12 = arith.constant 0 : index
    %c0_13 = arith.constant 0 : index
    %17 = vector.load %arg6[%c0_12, %c0_13] : memref<256x128xbf16, #tpu.memory_space<vmem>>, vector<256x128xbf16>
    %cst_14 = arith.constant dense<0.000000e+00> : vector<8x128xf32>
    %18 = tpu.matmul %16, %17, %cst_14 {dimension_numbers = #tpu.dot_dimension_numbers<[1], [0], [0], [1], [0, 0, 1, 1], [], []>} : vector<8x256xbf16>, vector<256x128xbf16>, vector<8x128xf32> -> vector<8x128xf32>
    %c0_15 = arith.constant 0 : index
    %c0_16 = arith.constant 0 : index
    %19 = vector.load %arg7[%c0_15, %c0_16] : memref<1x128xf32, #tpu.memory_space<vmem>>, vector<1x128xf32>
    %20 = vector.broadcast %19 : vector<1x128xf32> to vector<8x128xf32>
    %21 = arith.addf %18, %20 : vector<8x128xf32>
    %c0_17 = arith.constant 0 : index
    %c0_18 = arith.constant 0 : index
    %22 = vector.load %arg9[%c0_17, %c0_18] : memref<1x128xi32, #tpu.memory_space<vmem>>, vector<1x128xi32>
    %c127_i32 = arith.constant 127 : i32
    %23 = tpu.dynamic_rotate %21 by %c127_i32 dim 1 : vector<8x128xf32>, i32 -> vector<8x128xf32>
    %c7_i32 = arith.constant 7 : i32
    %24 = tpu.dynamic_rotate %21 by %c7_i32 dim 1 : vector<8x128xf32>, i32 -> vector<8x128xf32>
    %c7_i32_19 = arith.constant 7 : i32
    %25 = vector.broadcast %c7_i32_19 : i32 to vector<1x128xi32>
    %26 = arith.cmpi slt, %22, %25 : vector<1x128xi32>
    %27 = vector.shape_cast %26 : vector<1x128xi1> to vector<1x128xi1>
    %28 = vector.broadcast %27 : vector<1x128xi1> to vector<8x128xi1>
    %29 = arith.select %28, %23, %24 : vector<8x128xi1>, vector<8x128xf32>
    %30 = arith.maximumf %21, %29 : vector<8x128xf32>
    %c126_i32 = arith.constant 126 : i32
    %31 = tpu.dynamic_rotate %30 by %c126_i32 dim 1 : vector<8x128xf32>, i32 -> vector<8x128xf32>
    %c6_i32 = arith.constant 6 : i32
    %32 = tpu.dynamic_rotate %30 by %c6_i32 dim 1 : vector<8x128xf32>, i32 -> vector<8x128xf32>
    %c6_i32_20 = arith.constant 6 : i32
    %33 = vector.broadcast %c6_i32_20 : i32 to vector<1x128xi32>
    %34 = arith.cmpi slt, %22, %33 : vector<1x128xi32>
    %35 = vector.shape_cast %34 : vector<1x128xi1> to vector<1x128xi1>
    %36 = vector.broadcast %35 : vector<1x128xi1> to vector<8x128xi1>
    %37 = arith.select %36, %31, %32 : vector<8x128xi1>, vector<8x128xf32>
    %38 = arith.maximumf %30, %37 : vector<8x128xf32>
    %c124_i32 = arith.constant 124 : i32
    %39 = tpu.dynamic_rotate %38 by %c124_i32 dim 1 : vector<8x128xf32>, i32 -> vector<8x128xf32>
    %c4_i32 = arith.constant 4 : i32
    %40 = tpu.dynamic_rotate %38 by %c4_i32 dim 1 : vector<8x128xf32>, i32 -> vector<8x128xf32>
    %c4_i32_21 = arith.constant 4 : i32
    %41 = vector.broadcast %c4_i32_21 : i32 to vector<1x128xi32>
    %42 = arith.cmpi slt, %22, %41 : vector<1x128xi32>
    %43 = vector.shape_cast %42 : vector<1x128xi1> to vector<1x128xi1>
    %44 = vector.broadcast %43 : vector<1x128xi1> to vector<8x128xi1>
    %45 = arith.select %44, %39, %40 : vector<8x128xi1>, vector<8x128xf32>
    %46 = arith.maximumf %38, %45 : vector<8x128xf32>
    %47 = arith.subf %21, %46 : vector<8x128xf32>
    %48 = math.exp %47 : vector<8x128xf32>
    %49 = arith.truncf %48 : vector<8x128xf32> to vector<8x128xbf16>
    %c0_22 = arith.constant 0 : index
    %c0_23 = arith.constant 0 : index
    %50 = vector.load %arg8[%c0_22, %c0_23] : memref<128x128xbf16, #tpu.memory_space<vmem>>, vector<128x128xbf16>
    %cst_24 = arith.constant dense<0.000000e+00> : vector<8x128xf32>
    %51 = tpu.matmul %49, %50, %cst_24 {dimension_numbers = #tpu.dot_dimension_numbers<[1], [0], [0], [1], [0, 0, 1, 1], [], []>} : vector<8x128xbf16>, vector<128x128xbf16>, vector<8x128xf32> -> vector<8x128xf32>
    %52 = tpu.reciprocal %51 {approx = true} : vector<8x128xf32> -> vector<8x128xf32>
    %53 = arith.mulf %48, %52 : vector<8x128xf32>
    %c0_25 = arith.constant 0 : index
    %c0_26 = arith.constant 0 : index
    %54 = vector.load %arg10[%c0_25, %c0_26] : memref<8x256xf32, #tpu.memory_space<vmem>>, vector<8x128xf32>
    tpu.vector_store %arg10[%c0_25, %c0_26], %53 {strides = array<i32>} : memref<8x256xf32, #tpu.memory_space<vmem>>, vector<8x128xf32>,
    %55 = math.log %51 : vector<8x128xf32>
    %56 = arith.subf %47, %55 : vector<8x128xf32>
    %c0_27 = arith.constant 0 : index
    %c128 = arith.constant 128 : index
    %57 = vector.load %arg10[%c0_27, %c128] : memref<8x256xf32, #tpu.memory_space<vmem>>, vector<8x128xf32>
    tpu.vector_store %arg10[%c0_27, %c128], %56 {strides = array<i32>} : memref<8x256xf32, #tpu.memory_space<vmem>>, vector<8x128xf32>,
    return
  }
  func.func @transform_0(%arg0: i32) -> (i32, i32) {
    %c0_i32 = arith.constant 0 : i32
    %c0_i32_0 = arith.constant 0 : i32
    return %arg0, %c0_i32 : i32, i32
  }
  func.func @transform_1(%arg0: i32) -> (i32, i32) {
    %c0_i32 = arith.constant 0 : i32
    %c0_i32_0 = arith.constant 0 : i32
    %c0_i32_1 = arith.constant 0 : i32
    return %c0_i32, %c0_i32_0 : i32, i32
  }
  func.func @transform_2(%arg0: i32) -> (i32, i32) {
    %c0_i32 = arith.constant 0 : i32
    %c0_i32_0 = arith.constant 0 : i32
    %c0_i32_1 = arith.constant 0 : i32
    return %c0_i32, %c0_i32_0 : i32, i32
  }
  func.func @transform_3(%arg0: i32) -> (i32, i32) {
    %c0_i32 = arith.constant 0 : i32
    %c0_i32_0 = arith.constant 0 : i32
    %c0_i32_1 = arith.constant 0 : i32
    return %c0_i32, %c0_i32_0 : i32, i32
  }
  func.func @transform_4(%arg0: i32) -> (i32, i32) {
    %c0_i32 = arith.constant 0 : i32
    %c0_i32_0 = arith.constant 0 : i32
    %c0_i32_1 = arith.constant 0 : i32
    return %c0_i32, %c0_i32_0 : i32, i32
  }
  func.func @transform_5(%arg0: i32) -> (i32, i32) {
    %c0_i32 = arith.constant 0 : i32
    %c0_i32_0 = arith.constant 0 : i32
    %c0_i32_1 = arith.constant 0 : i32
    return %c0_i32, %c0_i32_0 : i32, i32
  }
  func.func @transform_6(%arg0: i32) -> (i32, i32) {
    %c0_i32 = arith.constant 0 : i32
    %c0_i32_0 = arith.constant 0 : i32
    %c0_i32_1 = arith.constant 0 : i32
    return %c0_i32, %c0_i32_0 : i32, i32
  }
  func.func @transform_7(%arg0: i32) -> (i32, i32) {
    %c0_i32 = arith.constant 0 : i32
    %c0_i32_0 = arith.constant 0 : i32
    %c0_i32_1 = arith.constant 0 : i32
    return %c0_i32, %c0_i32_0 : i32, i32
  }
  func.func @transform_8(%arg0: i32) -> (i32, i32) {
    %c0_i32 = arith.constant 0 : i32
    %c0_i32_0 = arith.constant 0 : i32
    %c0_i32_1 = arith.constant 0 : i32
    return %c0_i32, %c0_i32_0 : i32, i32
  }
  func.func @transform_9(%arg0: i32) -> (i32, i32) {
    %c0_i32 = arith.constant 0 : i32
    %c0_i32_0 = arith.constant 0 : i32
    return %arg0, %c0_i32 : i32, i32
  }
}

</mosaic_0001>

<bundles_post_ra>
// kernel: tpu_custom_call.1
= control target key start
LH: loop header
LB: loop body
LE: loop exit
PB: predicated region body
PF: predicated region fallthrough
CT: control target
= control target key end

     0   :  { %14 = vsyncpa [#allocation3], 0  ;;  %s1253_s0 = inlined_call_operand.hbm [shape: bf16[8,32], index: 0, kind: input, shape index: {}]   ;;  %s1254_s1 = inlined_call_operand.hbm [shape: bf16[32,256], index: 1, kind: input, shape index: {}]   ;;  %s1255_s2 = inlined_call_operand.vmem [shape: f32[1,256], index: 2, kind: input, shape index: {}]   ;;  %s1256_s3 = inlined_call_operand.hbm [shape: bf16[256,256], index: 3, kind: input, shape index: {}]   ;;  %s1257_s4 = inlined_call_operand.vmem [shape: f32[1,256], index: 4, kind: input, shape index: {}]   ;;  %s1258_s5 = inlined_call_operand.hbm [shape: bf16[256,128], index: 5, kind: input, shape index: {}]   ;;  %s1259_s6 = inlined_call_operand.vmem [shape: f32[1,128], index: 6, kind: input, shape index: {}]   ;;  %s1260_s7 = inlined_call_operand.hbm [shape: bf16[128,128], index: 7, kind: input, shape index: {}]   ;;  %s1261_s8 = inlined_call_operand.vmem [shape: s32[1,128], index: 8, kind: input, shape index: {}]   ;;  %s1262_s9 = inlined_call_operand.hbm [shape: f32[8,256], index: 9, kind: output, shape index: {}]  }
   0x1   :  { %15 = vsyncpa [#allocation6], 0 }
   0x2   :  { %16 = vsyncpa [#allocation9], 0 }
   0x3   :  { %17 = vsyncpa [#allocation4], 0  ;;  %s1125_s30 = smov [#allocation5]  }
   0x4   :  { %s33_s10 = sshll.u32 %s1125_s30, 4  ;;  %s34_s10 = int_to_ptr.vmem [resolvable:$true] %s33_s10 }
   0x5   :  { %s1005_s11 = scalar_lea.vmem %s34_s10, 512  ;;  %p1010_p1 = scmp.lt.s32.totalorder %s34_s10, %s34_s10 }
   0x6   :  { %p1006_p0 = scmp.ne.s32.totalorder %s34_s10, %s1005_s11  ;;  %p1011_p2 = scmp.lt.s32.totalorder %s1005_s11, %s1005_s11 }
   0x8   :  { %p1012_p3 = por %p1011_p2, %p1010_p1 }
   0xa   :  { %p1013_p4 = pnand %p1012_p3, %p1006_p0 }
   0xc   :  { %1016 = shalt.err (!%p1013_p4)
}
   0xd   :  { %s1126_s12 = smov 128   ;;  %s1127_s13 = smov 8  }
   0xe   :  { %39 = dma.hbm_to_vmem [thread:$0]  %s1254_s1, 512, %s34_s10, [#allocation6], %s1126_s12, %s1126_s12, %s1127_s13  }
   0xf   :  { %s1128_s16 = smov [#allocation8]  }
  0x10   :  { %s61_s17 = sshll.u32 %s1128_s16, 4  ;;  %s62_s17 = int_to_ptr.vmem [resolvable:$true] %s61_s17 }
  0x11   :  { %s1025_s18 = scalar_lea.vmem %s62_s17, 2048  ;;  %p1030_p6 = scmp.lt.s32.totalorder %s62_s17, %s62_s17 }
  0x12   :  { %p1026_p5 = scmp.ne.s32.totalorder %s62_s17, %s1025_s18  ;;  %p1031_p7 = scmp.lt.s32.totalorder %s1025_s18, %s1025_s18 }
  0x14   :  { %p1032_p8 = por %p1031_p7, %p1030_p6 }
  0x16   :  { %p1033_p9 = pnand %p1032_p8, %p1026_p5 }
  0x18   :  { %1036 = shalt.err (!%p1033_p9)
}
  0x19   :  { %s1129_s19 = smov 64   ;;  %s1130_s20 = smov 4  }
  0x1a   :  { %67 = dma.hbm_to_vmem [thread:$0]  %s1258_s5, 2048, %s62_s17, [#allocation9], %s1129_s19, %s1129_s19, %s1130_s20  }
  0x1b   :  { %s1131_s1 = smov [#allocation2]   ;;  %s1132_s24 = smov [#allocation7]  }
  0x1c   :  { %s24_s23 = sshll.u32 %s1131_s1, 4  ;;  %s47_s25 = sshll.u32 %s1132_s24, 4  ;;  %s25_s23 = int_to_ptr.vmem [resolvable:$true] %s24_s23  ;;  %s48_s25 = int_to_ptr.vmem [resolvable:$true] %s47_s25 }
  0x1d   :  { %s1045_s26 = scalar_lea.vmem %s25_s23, 64  ;;  %p1050_p11 = scmp.lt.s32.totalorder %s25_s23, %s25_s23 }
  0x1e   :  { %p1046_p10 = scmp.ne.s32.totalorder %s25_s23, %s1045_s26  ;;  %p1051_p12 = scmp.lt.s32.totalorder %s1045_s26, %s1045_s26 }
  0x20   :  { %p1052_p13 = por %p1051_p12, %p1050_p11 }
  0x22   :  { %p1053_p0 = pnand %p1052_p13, %p1046_p10 }
  0x24   :  { %1056 = shalt.err (!%p1053_p0)
}
  0x25   :  { %27 = dma.hbm_to_vmem [thread:$0]  %s1253_s0, 64, %s25_s23, [#allocation3]  }
  0x26   :  { %s1065_s29 = scalar_lea.vmem %s48_s25, 4096  ;;  %p1070_p2 = scmp.lt.s32.totalorder %s48_s25, %s48_s25 }
  0x27   :  { %p1066_p1 = scmp.ne.s32.totalorder %s48_s25, %s1065_s29  ;;  %p1071_p3 = scmp.lt.s32.totalorder %s1065_s29, %s1065_s29 }
  0x29   :  { %p1072_p4 = por %p1071_p3, %p1070_p2 }
  0x2b   :  { %p1073_p5 = pnand %p1072_p4, %p1066_p1 }
  0x2d   :  { %1076 = shalt.err (!%p1073_p5)
}
  0x2e   :  { %53 = dma.hbm_to_vmem [thread:$0]  %s1256_s3, 4096, %s48_s25, [#allocation6], %s1126_s12, %s1126_s12, %s1127_s13  }
  0x2f   :  { %s1133_s10 = smov [#allocation10]  }
  0x30   :  { %s75_s11 = sshll.u32 %s1133_s10, 4  ;;  %s76_s11 = int_to_ptr.vmem [resolvable:$true] %s75_s11 }
  0x31   :  { %s1085_s14 = scalar_lea.vmem %s76_s11, 1024  ;;  %p1090_p7 = scmp.lt.s32.totalorder %s76_s11, %s76_s11 }
  0x32   :  { %p1086_p6 = scmp.ne.s32.totalorder %s76_s11, %s1085_s14  ;;  %p1091_p8 = scmp.lt.s32.totalorder %s1085_s14, %s1085_s14 }
  0x34   :  { %p1092_p9 = por %p1091_p8, %p1090_p7 }
  0x36   :  { %p1093_p10 = pnand %p1092_p9, %p1086_p6 }
  0x38   :  { %1096 = shalt.err (!%p1093_p10)
}
  0x39   :  { %81 = dma.hbm_to_vmem [thread:$0]  %s1260_s7, 1024, %s76_s11, [#allocation9], %s1129_s19, %s1129_s19, %s1130_s20  }
  0x3a   :  { %1117 = dma.done.wait [#allocation3], 64  }
  0x3b   :  { %1118 = vsyncadd [#allocation3], 4294967232 }
  0x3c   :  { %1119 = dma.done.wait [#allocation6], 4608  }
  0x3d   :  { %1120 = vsyncadd [#allocation6], 4294962688 }
  0x3e   :  { %1121 = dma.done.wait [#allocation9], 3072  }
  0x3f   :  { %1122 = vsyncadd [#allocation9], 4294964224  ;;  %v1134_v0 = vmov 0   ;;  %v913_v1 = vld [vmem:[#allocation5 + $0x14] ss:$8 sps:$4 sm:$0xff]   ;;  %vm137_vm0 = vcmask 261120   ;;  %v107_v50 = vlaneseq }
  0x40   :  { %173 = vmatprep.mubr.bf16.mxu0 %v1134_v0  ;;  %v915_v2 = vld [vmem:[#allocation5 + $0x10] ss:$8 sps:$4 sm:$0xff]   ;;  %153 = vmatprep.subr.bf16.mxu0 %v913_v1  ;;  %v916_v3 = vld [vmem:[#allocation5 + $0x4] ss:$8 sps:$4 sm:$0xff]   ;;  %v918_v4 = vld [vmem:[#allocation5] ss:$8 sps:$4 sm:$0xff]  }
  0x41   :  { %154 = vmatpush1.bf16.msra.mxu0 %v915_v2  ;;  %v919_v5 = vld [vmem:[#allocation7 + $0x74] ss:$8 sps:$4 sm:$0xff]   ;;  %v921_v6 = vld [vmem:[#allocation7 + $0x70] ss:$8 sps:$4 sm:$0xff]   ;;  %v922_v7 = vld [vmem:[#allocation7 + $0x64] ss:$8 sps:$4 sm:$0xff]  }
  0x42   :  { %155 = vmatprep.subr.bf16.mxu0 %v916_v3  ;;  %390 = vmatprep.subr.bf16.mxu1 %v919_v5  ;;  %v100_v8 = vld [vmem:[#allocation2] sm:$0xf]  ;;  %v924_v9 = vld [vmem:[#allocation7 + $0x60] ss:$8 sps:$4 sm:$0xff]   ;;  %v927_v11 = vld [vmem:[#allocation7 + $0x50] ss:$8 sps:$4 sm:$0xff]  }
  0x43   :  { %391 = vmatpush1.bf16.msra.mxu1 %v921_v6  ;;  %v925_v10 = vld [vmem:[#allocation7 + $0x54] ss:$8 sps:$4 sm:$0xff]   ;;  %v928_v12 = vld [vmem:[#allocation7 + $0x44] ss:$8 sps:$4 sm:$0xff]   ;;  %v930_v13 = vld [vmem:[#allocation7 + $0x40] ss:$8 sps:$4 sm:$0xff]  }
  0x44   :  { %392 = vmatprep.subr.bf16.mxu1 %v922_v7  ;;  %v931_v14 = vld [vmem:[#allocation7 + $0x34] ss:$8 sps:$4 sm:$0xff]   ;;  %v933_v15 = vld [vmem:[#allocation7 + $0x30] ss:$8 sps:$4 sm:$0xff]   ;;  %v934_v16 = vld [vmem:[#allocation7 + $0x24] ss:$8 sps:$4 sm:$0xff]  }
  0x45   :  { %156 = vmatpush1.bf16.msra.mxu0 %v918_v4  ;;  %v936_v17 = vld [vmem:[#allocation7 + $0x20] ss:$8 sps:$4 sm:$0xff]   ;;  %v937_v18 = vld [vmem:[#allocation7 + $0x14] ss:$8 sps:$4 sm:$0xff]   ;;  %v939_v19 = vld [vmem:[#allocation7 + $0x10] ss:$8 sps:$4 sm:$0xff]  }
  0x46   :  { %v940_v20 = vld [vmem:[#allocation7 + $0x4] ss:$8 sps:$4 sm:$0xff]   ;;  %v942_v21 = vld [vmem:[#allocation7] ss:$8 sps:$4 sm:$0xff]   ;;  %v943_v22 = vld [vmem:[#allocation7 + $0xf4] ss:$8 sps:$4 sm:$0xff]  }
  0x47   :  { %393 = vmatpush1.bf16.msra.mxu1 %v924_v9  ;;  %v945_v23 = vld [vmem:[#allocation7 + $0xf0] ss:$8 sps:$4 sm:$0xff]   ;;  %v946_v24 = vld [vmem:[#allocation7 + $0xe4] ss:$8 sps:$4 sm:$0xff]   ;;  %v948_v25 = vld [vmem:[#allocation7 + $0xe0] ss:$8 sps:$4 sm:$0xff]  }
  0x48   :  { %786 = vmatmul.mubr.msk.bf16.vlgmr.msra.gmra.mxu0 %vm137_vm0, %v100_v8  ;;  %394 = vmatprep.subr.bf16.mxu1 %v925_v10  ;;  %v949_v26 = vld [vmem:[#allocation7 + $0xd4] ss:$8 sps:$4 sm:$0xff]   ;;  %v951_v27 = vld [vmem:[#allocation7 + $0xd0] ss:$8 sps:$4 sm:$0xff]   ;;  %v952_v28 = vld [vmem:[#allocation7 + $0xc4] ss:$8 sps:$4 sm:$0xff]  }
  0x49   :  { %v954_v29 = vld [vmem:[#allocation7 + $0xc0] ss:$8 sps:$4 sm:$0xff]   ;;  %v955_v30 = vld [vmem:[#allocation7 + $0xb4] ss:$8 sps:$4 sm:$0xff]   ;;  %v957_v31 = vld [vmem:[#allocation7 + $0xb0] ss:$8 sps:$4 sm:$0xff]  }
  0x4a   :  { %v958_v32 = vld [vmem:[#allocation7 + $0xa4] ss:$8 sps:$4 sm:$0xff]   ;;  %v960_v33 = vld [vmem:[#allocation7 + $0xa0] ss:$8 sps:$4 sm:$0xff]   ;;  %v961_v34 = vld [vmem:[#allocation7 + $0x94] ss:$8 sps:$4 sm:$0xff]  }
  0x4b   :  { %395 = vmatpush1.bf16.msra.mxu1 %v927_v11  ;;  %v963_v35 = vld [vmem:[#allocation7 + $0x90] ss:$8 sps:$4 sm:$0xff]   ;;  %v964_v36 = vld [vmem:[#allocation7 + $0x84] ss:$8 sps:$4 sm:$0xff]   ;;  %v966_v37 = vld [vmem:[#allocation7 + $0x80] ss:$8 sps:$4 sm:$0xff]  }
  0x4c   :  { %396 = vmatprep.subr.bf16.mxu1 %v928_v12  ;;  %v967_v38 = vld [vmem:[#allocation8 + $0x78] sm:$0xff]   ;;  %v969_v40 = vld [vmem:[#allocation8 + $0x70] sm:$0xff]   ;;  %v971_v42 = vld [vmem:[#allocation8 + $0x68] sm:$0xff]   ;;  %v108_v51 = vshrl.u32 %v107_v50, 7  ;;  %s1136_s17 = smov 7   ;;  %vm1140_vm5 = vmmov 0  }
  0x4d   :  { %v968_v39 = vld [vmem:[#allocation8 + $0x38] sm:$0xff]   ;;  %844 = vmatprep.subr.bf16.mxu0 %v967_v38  ;;  %v970_v41 = vld [vmem:[#allocation8 + $0x30] sm:$0xff]   ;;  %v972_v43 = vld [vmem:[#allocation8 + $0x28] sm:$0xff]   ;;  %s1141_s21 = smov 124  }
  0x4e   :  { %845 = vmatpush3.bf16.msra.mxu0 %v968_v39  ;;  %v973_v44 = vld [vmem:[#allocation8 + $0x60] sm:$0xff]   ;;  %v975_v46 = vld [vmem:[#allocation8 + $0x58] sm:$0xff]   ;;  %v977_v48 = vld [vmem:[#allocation8 + $0x50] sm:$0xff]   ;;  %v1221_v52 = vsub.s32 0, %v108_v51  ;;  %v113_v54 = vsub.s32 1, %v108_v51 }
  0x4f   :  { %397 = vmatpush1.bf16.msra.mxu1 %v930_v13  ;;  %846 = vmatprep.subr.bf16.mxu0 %v969_v40  ;;  %v974_v45 = vld [vmem:[#allocation8 + $0x20] sm:$0xff]   ;;  %v976_v47 = vld [vmem:[#allocation8 + $0x18] sm:$0xff]   ;;  %v978_v49 = vld [vmem:[#allocation8 + $0x10] sm:$0xff]  }
  0x50   :  { %398 = vmatprep.subr.bf16.mxu1 %v931_v14  ;;  %v105_v53 = vld [vmem:[%s1255_s2] sm:$0x3]  ;;  %v979_v4 = vld [vmem:[#allocation8 + $0x48] sm:$0xff]   ;;  %v981_v6 = vld [vmem:[#allocation8 + $0x40] sm:$0xff]  }
  0x51   :  { %v110_v55 = vrot.slane %v105_v53, %v1221_v52  ;;  %v114_v56 = vrot.slane %v105_v53, %v113_v54  ;;  %v980_v5 = vld [vmem:[#allocation8 + $0x8] sm:$0xff]   ;;  %v982_v7 = vld [vmem:[#allocation8] sm:$0xff]   ;;  %v218_v8 = vld [vmem:[%s1257_s4] sm:$0x3]  ;;  %s1135_s4 = smov 127  }
  0x52   :  { %847 = vmatpush3.bf16.msra.mxu0 %v970_v41  ;;  %v223_v9 = vrot.slane %v218_v8, %v1221_v52  ;;  %v227_v10 = vrot.slane %v218_v8, %v113_v54  ;;  %v985_v38 = vld [vmem:[#allocation10 + $0x28] sm:$0xff]   ;;  %v986_v40 = vld [vmem:[#allocation10 + $0x20] sm:$0xff]  }
  0x53   :  { %399 = vmatpush1.bf16.msra.mxu1 %v933_v15  ;;  %848 = vmatprep.subr.bf16.mxu0 %v971_v42 }
  0x54   :  { %400 = vmatprep.subr.bf16.mxu1 %v934_v16 }
  0x56   :  { %849 = vmatpush3.bf16.msra.mxu0 %v972_v43  ;;  %v987_v43 = vld [vmem:[#allocation10 + $0x18] sm:$0xff]  }
  0x57   :  { %401 = vmatpush1.bf16.msra.mxu1 %v936_v17  ;;  %850 = vmatprep.subr.bf16.mxu0 %v973_v44  ;;  %v988_v44 = vld [vmem:[#allocation10 + $0x10] sm:$0xff]  }
  0x58   :  { %402 = vmatprep.subr.bf16.mxu1 %v937_v18 }
  0x5a   :  { %851 = vmatpush3.bf16.msra.mxu0 %v974_v45 }
  0x5b   :  { %403 = vmatpush1.bf16.msra.mxu1 %v939_v19  ;;  %852 = vmatprep.subr.bf16.mxu0 %v975_v46 }
  0x5c   :  { %404 = vmatprep.subr.bf16.mxu1 %v940_v20 }
  0x5e   :  { %853 = vmatpush3.bf16.msra.mxu0 %v976_v47 }
  0x5f   :  { %405 = vmatpush1.bf16.msra.mxu1 %v942_v21  ;;  %854 = vmatprep.subr.bf16.mxu0 %v977_v48  ;;  %v989_v48 = vld [vmem:[#allocation10 + $0x8] sm:$0xff]  }
  0x60   :  { %406 = vmatprep.subr.bf16.mxu1 %v943_v22  ;;  %v819_v22 = vld [vmem:[%s1259_s6] ss:$0 sm:$0xff]  ;;  %s1138_s6 = smov 126  }
  0x62   :  { %855 = vmatpush3.bf16.msra.mxu0 %v978_v49  ;;  %v990_v49 = vld [vmem:[#allocation10] sm:$0xff]  }
  0x63   :  { %407 = vmatpush2.bf16.msra.mxu1 %v945_v23  ;;  %856 = vmatprep.subr.bf16.mxu0 %v979_v4 }
  0x64   :  { %408 = vmatprep.subr.bf16.mxu1 %v946_v24 }
  0x66   :  { %857 = vmatpush3.bf16.msra.mxu0 %v980_v5 }
  0x67   :  { %409 = vmatpush2.bf16.msra.mxu1 %v948_v25  ;;  %858 = vmatprep.subr.bf16.mxu0 %v981_v6 }
  0x68   :  { %410 = vmatprep.subr.bf16.mxu1 %v949_v26 }
  0x6a   :  { %859 = vmatpush3.bf16.msra.mxu0 %v982_v7 }
  0x6b   :  { %411 = vmatpush2.bf16.msra.mxu1 %v951_v27 }
  0x6c   :  { %412 = vmatprep.subr.bf16.mxu1 %v952_v28  ;;  %v610_v28 = vld [vmem:[%s1261_s8] sm:$0x1]  ;;  %s1139_s8 = smov 6  }
  0x6d   :  { %vm615_vm1 = vcmp.lt.s32.totalorder %v610_v28, 7  ;;  %vm628_vm3 = vcmp.lt.s32.totalorder %v610_v28, 6  ;;  %vm641_vm6 = vcmp.lt.s32.totalorder %v610_v28, 4 }
  0x6e   :  { %v629_v39 = vsel %vm628_vm3, 1, %v1134_v0  ;;  %v642_v50 = vsel %vm641_vm6, 1, %v1134_v0 }
  0x6f   :  { %413 = vmatpush2.bf16.msra.mxu1 %v954_v29  ;;  %v616_v29 = vsel %vm615_vm1, 1, %v1134_v0  ;;  %v633_v41 = vrot.slane %v629_v39, %v1221_v52  ;;  %v646_v51 = vrot.slane %v642_v50, %v1221_v52 }
  0x70   :  { %414 = vmatprep.subr.bf16.mxu1 %v955_v30  ;;  %v620_v30 = vrot.slane %v616_v29, %v1221_v52 }
  0x71   :  { %vm634_vm4 = vcmp.eq.s32.totalorder %v633_v41, 1  ;;  %vm647_vm7 = vcmp.eq.s32.totalorder %v646_v51, 1 }
  0x72   :  { %vm621_vm2 = vcmp.eq.s32.totalorder %v620_v30, 1 }
  0x73   :  { %415 = vmatpush2.bf16.msra.mxu1 %v957_v31 }
  0x74   :  { %416 = vmatprep.subr.bf16.mxu1 %v958_v32  ;;  %v983_v32 = vld [vmem:[#allocation10 + $0x38] sm:$0xff]  }
  0x77   :  { %417 = vmatpush2.bf16.msra.mxu1 %v960_v33  ;;  %v1137_v33 = vmov 0.0  }
  0x78   :  { %418 = vmatprep.subr.bf16.mxu1 %v961_v34  ;;  %875 = vmatprep.subr.bf16.mxu0 %v1137_v33 }
  0x7b   :  { %419 = vmatpush2.bf16.msra.mxu1 %v963_v35  ;;  %v984_v35 = vld [vmem:[#allocation10 + $0x30] sm:$0xff]  }
  0x7c   :  { %420 = vmatprep.subr.bf16.mxu1 %v964_v36 }
  0x7f   :  { %421 = vmatpush2.bf16.msra.mxu1 %v966_v37 }
 0x108   :  { %v175_v57 = vpop.f32.mrf.mxu0 }
 0x109   :  { %v176_v58 = vadd.f32 %v175_v57, %v110_v55 }
 0x10a   :  { %v177_v59 = vpop.f32.mrf.mxu0 }
 0x10b   :  { %v178_v60 = vadd.f32 %v177_v59, %v114_v56  ;;  %v182_v61 = vmax.f32 %v176_v58, 0.0 }
 0x10c   :  { %v179_v62 = vpop.f32.mrf.mxu0 }
 0x10d   :  { %v183_v63 = vmax.f32 %v178_v60, 0.0  ;;  %v184_v3 = vpack.c.bf16 %v182_v61, %v182_v61 }
 0x10e   :  { %v180_v1 = vpop.f32.mrf.mxu0 }
 0x10f   :  { %v185_v2 = vpack.c.bf16 %v183_v63, %v183_v63 }
 0x111   :  { %422 = vmatprep.mubr.bf16.mxu1 %v185_v2 }
 0x112   :  { %423 = vmatmul.mubr.bf16.vlgmr.msra.gmra.mxu1 %v184_v3 }
 0x1d2   :  { %v424_v11 = vpop.f32.mrf.mxu1 }
 0x1d3   :  { %v425_v12 = vadd.f32 %v424_v11, %v223_v9 }
 0x1d4   :  { %v426_v13 = vpop.f32.mrf.mxu1 }
 0x1d5   :  { %v427_v14 = vadd.f32 %v426_v13, %v227_v10  ;;  %v431_v15 = vmax.f32 %v425_v12, 0.0 }
 0x1d6   :  { %v428_v16 = vpop.f32.mrf.mxu1 }
 0x1d7   :  { %v432_v17 = vmax.f32 %v427_v14, 0.0  ;;  %v433_v20 = vpack.c.bf16 %v431_v15, %v431_v15 }
 0x1d8   :  { %v429_v18 = vpop.f32.mrf.mxu1 }
 0x1d9   :  { %v434_v19 = vpack.c.bf16 %v432_v17, %v432_v17 }
 0x1db   :  { %602 = vmatprep.mubr.bf16.mxu0 %v434_v19 }
 0x1dc   :  { %603 = vmatmul.mubr.bf16.vlgmr.msra.gmra.mxu0 %v433_v20 }
 0x1dd   :  { %876 = vmatpush3.bf16.msra.mxu0 %v983_v32  ;;  %891 = vmatprep.mubr.msk.bf16.mxu0 %vm1140_vm5, %v1137_v33 }
 0x1de   :  { %877 = vmatprep.subr.bf16.mxu0 %v1137_v33 }
 0x1e1   :  { %878 = vmatpush3.bf16.msra.mxu0 %v984_v35 }
 0x1e2   :  { %879 = vmatprep.subr.bf16.mxu0 %v1137_v33 }
 0x1e5   :  { %880 = vmatpush3.bf16.msra.mxu0 %v985_v38 }
 0x1e6   :  { %881 = vmatprep.subr.bf16.mxu0 %v1137_v33 }
 0x1e9   :  { %882 = vmatpush3.bf16.msra.mxu0 %v986_v40 }
 0x1ea   :  { %883 = vmatprep.subr.bf16.mxu0 %v1137_v33 }
 0x1ed   :  { %884 = vmatpush3.bf16.msra.mxu0 %v987_v43 }
 0x1ee   :  { %885 = vmatprep.subr.bf16.mxu0 %v1137_v33 }
 0x1f1   :  { %886 = vmatpush3.bf16.msra.mxu0 %v988_v44 }
 0x1f2   :  { %887 = vmatprep.subr.bf16.mxu0 %v1137_v33 }
 0x1f5   :  { %888 = vmatpush3.bf16.msra.mxu0 %v989_v48 }
 0x1f6   :  { %889 = vmatprep.subr.bf16.mxu0 %v1137_v33 }
 0x1f9   :  { %890 = vmatpush3.bf16.msra.mxu0 %v990_v49 }
 0x29c   :  { %v860_v21 = vpop.f32.mrf.mxu0 }
 0x29e   :  { %v861_v23 = vpop.f32.mrf.mxu0 }
 0x29f   :  { %v862_v24 = vadd.f32 %v861_v23, %v860_v21 }
 0x2a0   :  { %v863_v25 = vpop.f32.mrf.mxu0 }
 0x2a1   :  { %v1234_v26 = vadd.f32 %v862_v24, %v819_v22 }
 0x2a2   :  { %v864_v27 = vpop.f32.mrf.mxu0 }
 0x2a3   :  { %611 = vrot.lane.b32.xlu0 %v1234_v26, %s1135_s4 }
 0x2a7   :  { %613 = vrot.lane.b32.xlu0 %v1234_v26, %s1136_s17 }
 0x315   :  { %v612_v31 = vpop.permute.xlu0 %611 }
 0x319   :  { %v614_v34 = vpop.permute.xlu0 %613 }
 0x31a   :  { %v622_v36 = vsel %vm621_vm2, %v612_v31, %v614_v34 }
 0x31b   :  { %v623_v37 = vmax.f32 %v1234_v26, %v622_v36 }
 0x31d   :  { %624 = vrot.lane.b32.xlu1 %v623_v37, %s1138_s6 }
 0x321   :  { %626 = vrot.lane.b32.xlu1 %v623_v37, %s1139_s8 }
 0x38f   :  { %v625_v42 = vpop.permute.xlu1 %624 }
 0x393   :  { %v627_v45 = vpop.permute.xlu1 %626 }
 0x394   :  { %v635_v46 = vsel %vm634_vm4, %v625_v42, %v627_v45 }
 0x395   :  { %v636_v47 = vmax.f32 %v623_v37, %v635_v46 }
 0x397   :  { %639 = vrot.lane.b32.xlu1 %v636_v47, %s1130_s20  ;;  %637 = vrot.lane.b32.xlu0 %v636_v47, %s1141_s21  ;;  %s1142_s20 = smov [#allocation11]  }
 0x398   :  { %s771_s22 = sshll.u32 %s1142_s20, 4  ;;  %s772_s22 = int_to_ptr.vmem [resolvable:$true] %s771_s22 }
 0x399   :  { %s1097_s1 = scalar_lea.vmem %s772_s22, 256  ;;  %p1102_p12 = scmp.lt.s32.totalorder %s772_s22, %s772_s22 }
 0x39a   :  { %p1098_p11 = scmp.ne.s32.totalorder %s772_s22, %s1097_s1  ;;  %p1103_p13 = scmp.lt.s32.totalorder %s1097_s1, %s1097_s1 }
 0x39c   :  { %p1104_p0 = por %p1103_p13, %p1102_p12 }
 0x39e   :  { %p1105_p1 = pnand %p1104_p0, %p1098_p11 }
 0x409   :  { %v640_v53 = vpop.permute.xlu1 %639  ;;  %v638_v54 = vpop.permute.xlu0 %637 }
 0x40a   :  { %v648_v55 = vsel %vm647_vm7, %v638_v54, %v640_v53 }
 0x40b   :  { %v649_v56 = vmax.f32 %v636_v47, %v648_v55 }
 0x40d   :  { %v650_v57 = vsub.f32 %v1234_v26, %v649_v56 }
 0x40f   :  { %v651_v58 = vmul.f32 1.442695, %v650_v57 }
 0x411   :  { %991 = vpow2.f32 %v651_v58 }
 0x41e   :  { %v992_v59 = vpop.eup %991 }
 0x41f   :  { %v653_v60 = vpack.c.bf16 %v992_v59, %v992_v59 }
 0x421   :  { %892 = vmatmul.mubr.bf16.vlgmr.msra.gmra.mxu0 %v653_v60 }
 0x4e1   :  { %v752_v61 = vpop.f32.mrf.mxu0 }
 0x4e2   :  { %993 = vrcp.f32 %v752_v61 }
 0x4e3   :  { %995 = vlog2.f32 %v752_v61  ;;  %v893_v62 = vpop.f32.mrf.mxu0 }
 0x4e5   :  { %v755_v63 = vpop.f32.mrf.mxu0 }
 0x4e7   :  { %v894_v0 = vpop.f32.mrf.mxu0 }
 0x4ef   :  { %v994_v1 = vpop.eup %993 }
 0x4f0   :  { %v996_v52 = vpop.eup %995  ;;  %v759_v2 = vmul.f32 %v994_v1, %v992_v59 }
 0x4f1   :  { %v762_v3 = vmul.f32 0.6931472, %v996_v52 }
 0x4f2   :  { %760 = vst [vmem:[#allocation11] sm:$0xff] %v759_v2 }
 0x4f3   :  { %v763_v4 = vsub.f32 %v650_v57, %v762_v3 }
 0x4f5   :  { %764 = vst [vmem:[#allocation11 + $0x8] sm:$0xff] %v763_v4 }
 0x4f6   :  { %1108 = shalt.err (!%p1105_p1)
}
 0x4f7   :  { %774 = dma.vmem_to_hbm [thread:$0]  %s772_s22, 256, %s1262_s9, [#allocation4]  }
 0x4f8   :  { %1123 = dma.done.wait [#allocation4], 256  }
 0x4f9   :  { %1124 = vsyncadd [#allocation4], 4294967040 }
 0x4fa   :  { %778 = vsyncpa [#allocation3], 1 }
 0x4fb   :  { %779 = vsyncpa [#allocation6], 1 }
 0x4fc   :  { %780 = vsyncpa [#allocation9], 1 }
 0x4fd   :  { %781 = vsyncpa [#allocation4], 1 }

</bundles_post_ra>
